<compile_context>
chip_gen: v5e
topology: v5e:2x2
jax: 0.10.0
libtpu: 0.0.40
codegen_flags: <defaults>
</compile_context>

<pallas_src>
import functools

import numpy as np
import jax
import jax.numpy as jnp
from jax import lax
from jax.experimental import pallas as pl
from jax.experimental.pallas import tpu as pltpu


# ---------------------------------------------------------------------------
# Parameter folding: 3x3 conv -> banded matrices over the row-flattened lane axis
# ---------------------------------------------------------------------------
def _conv_band_matrices(w_hwio, W):
    """w_hwio: (3, 3, Ci, Co) -> (3, W*Ci, W*Co), one banded matrix per vertical tap kh.

    Output column block wo gets contributions from input column blocks
    wi = wo - 1 + kw (kw = 0..2) with weight w_hwio[kh, kw]; out-of-range wi
    (the zero padding in W) are simply dropped."""
    _, _, Ci, Co = w_hwio.shape
    w = np.asarray(w_hwio, np.float32)
    mats = np.zeros((3, W * Ci, W * Co), np.float32)
    for kh in range(3):
        for wo in range(W):
            for kw in range(3):
                wi = wo - 1 + kw
                if 0 <= wi < W:
                    mats[kh, wi * Ci:(wi + 1) * Ci, wo * Co:(wo + 1) * Co] = w[kh, kw]
    return mats


def _blockdiag_matrix(ws, W):
    """1x1 conv (Ci, Co) -> block-diagonal (W*Ci, W*Co) over the row-flattened lanes."""
    Ci, Co = ws.shape
    w = np.asarray(ws, np.float32)
    m = np.zeros((W * Ci, W * Co), np.float32)
    for wp in range(W):
        m[wp * Ci:(wp + 1) * Ci, wp * Co:(wp + 1) * Co] = w
    return m


def prepare_basic_block_params(w1_hwio, b1, w2_hwio, b2, ws, W, dtype=jnp.bfloat16):
    """Fold both 3x3 convs (all three kh taps concatenated along K) and the 1x1
    shortcut (also folded into conv2's K) into two dense matrices.

    NOTE: this W-folded lowering targets small W*C feature maps (as in this module);
    large feature maps would tile W and use an accumulation scheme instead."""
    kh_, kw_, Cin, Cmid = w1_hwio.shape
    Cout = w2_hwio.shape[3]
    assert (kh_, kw_) == (3, 3)

    w1m = _conv_band_matrices(w1_hwio, W)               # (3, W*Cin,  W*Cmid)
    w2m = _conv_band_matrices(w2_hwio, W)               # (3, W*Cmid, W*Cout)
    # Concatenate the three vertical taps along K: row order (kh, w, channel)
    # matches the in-kernel lane concat [x[r-1] | x[r] | x[r+1]].
    w1cat = w1m.reshape(3 * W * Cin, W * Cmid)          # (3*W*Cin, W*Cmid)
    w2cat = w2m.reshape(3 * W * Cmid, W * Cout)         # (3*W*Cmid, W*Cout)

    if ws is not None:
        # 1x1 conv shortcut folded into conv2's K (the extra K rows multiply x[r]).
        wsm = _blockdiag_matrix(ws, W)                   # (W*Cin, W*Cout)
        w2cat = np.concatenate([w2cat, wsm], axis=0)     # (3*W*Cmid + W*Cin, W*Cout)
    else:
        # identity shortcut (in_planes == planes, stride == 1): added directly
        # in-kernel, no block-diagonal eye matmul.
        assert Cin == Cout

    b1r = np.tile(np.asarray(b1, np.float32), W).reshape(1, W * Cmid)
    b2r = np.tile(np.asarray(b2, np.float32), W).reshape(1, W * Cout)
    return {
        "w1cat": jnp.asarray(w1cat, dtype),
        "b1r": jnp.asarray(b1r, jnp.float32),            # biases stay f32 (added to f32 acc)
        "w2cat": jnp.asarray(w2cat, dtype),
        "b2r": jnp.asarray(b2r, jnp.float32),
    }


# ---------------------------------------------------------------------------
# Fused kernel: conv1 + bias + relu  ->  conv2 + bias + shortcut + relu
# Exactly two MXU matmuls per image.
# ---------------------------------------------------------------------------
def _make_fused_kernel(identity_shortcut):
    def kernel(x_ref, w1_ref, b1_ref, w2_ref, b2_ref, o_ref):
        # x_ref : (1, H, W*Cin)             unpadded, row-flattened input image
        # w1_ref: (3*W*Cin, W*Cmid)         kh-concatenated banded conv1 weights
        # b1_ref: (1, W*Cmid)
        # w2_ref: (3*W*Cmid [+ W*Cin], W*Cout)  conv2 (+ folded 1x1 shortcut) weights
        # b2_ref: (1, W*Cout)
        # o_ref : (1, H, W*Cout)            lane-dense output tile
        x = x_ref[0]                                        # (H, XW)
        H, XW = x.shape

        # ---- conv1 (+bias, ReLU): one matmul, K = 3*XW --------------------
        # Row r needs x[r-1], x[r], x[r+1] (zero rows for the 1-px H padding).
        zx = jnp.zeros((1, XW), x.dtype)
        x_up = jnp.concatenate([zx, x[:H - 1]], axis=0)     # row r -> x[r-1]
        x_dn = jnp.concatenate([x[1:], zx], axis=0)         # row r -> x[r+1]
        xa = jnp.concatenate([x_up, x, x_dn], axis=1)       # (H, 3*XW)
        y1 = jnp.dot(xa, w1_ref[...], preferred_element_type=jnp.float32)
        y1 = jnp.maximum(y1 + b1_ref[...], 0.0).astype(x.dtype)   # (H, YW)
        YW = y1.shape[1]

        # ---- conv2 (+bias) + shortcut + residual ReLU: one matmul ---------
        zy = jnp.zeros((1, YW), y1.dtype)
        y_up = jnp.concatenate([zy, y1[:H - 1]], axis=0)
        y_dn = jnp.concatenate([y1[1:], zy], axis=0)
        if identity_shortcut:
            ya = jnp.concatenate([y_up, y1, y_dn], axis=1)          # (H, 3*YW)
        else:
            ya = jnp.concatenate([y_up, y1, y_dn, x], axis=1)       # (H, 3*YW+XW)
        acc = jnp.dot(ya, w2_ref[...], preferred_element_type=jnp.float32)
        if identity_shortcut:
            acc = acc + x.astype(jnp.float32)                       # XW == OW
        out = jnp.maximum(acc + b2_ref[...], 0.0)
        o_ref[0] = out.astype(o_ref.dtype)

    return kernel


# ---------------------------------------------------------------------------
# Forward wrapper
# ---------------------------------------------------------------------------
@jax.jit
def basic_block_forward(x_nhwc, params):
    N, H, W, Cin = x_nhwc.shape
    w1cat, b1r = params["w1cat"], params["b1r"]
    w2cat, b2r = params["w2cat"], params["b2r"]
    XW = W * Cin
    YW = w1cat.shape[1]
    OW = w2cat.shape[1]
    Cout = OW // W
    K2 = w2cat.shape[0]
    assert w1cat.shape[0] == 3 * XW
    assert K2 in (3 * YW, 3 * YW + XW)
    identity_shortcut = (K2 == 3 * YW)
    assert H >= 2
    cdtype = w1cat.dtype

    # Flatten each image row to W*Cin lanes (contiguous reshape); no H padding --
    # the halo rows are built in-kernel, so x is read from HBM exactly once.
    xr = x_nhwc.reshape(N, H, XW).astype(cdtype)

    # Grid = (N,): one full image per step (M = H rows per matmul). N >= 2 keeps
    # both v7x TensorCores fed via the "parallel" axis.
    # TODO(synk): for N == 1 or very large H*W*C, split H across grid steps (with a
    # 1-row halo) / stack several images per step to push M toward 128-256.
    kernel = _make_fused_kernel(identity_shortcut)
    out = pl.pallas_call(
        kernel,
        out_shape=jax.ShapeDtypeStruct((N, H, OW), cdtype),
        grid_spec=pltpu.PrefetchScalarGridSpec(
            num_scalar_prefetch=0,
            grid=(N,),
            in_specs=[
                pl.BlockSpec((1, H, XW), lambda n: (n, 0, 0)),   # per-image input
                pl.BlockSpec((3 * XW, YW), lambda n: (0, 0)),    # resident weights
                pl.BlockSpec((1, YW), lambda n: (0, 0)),
                pl.BlockSpec((K2, OW), lambda n: (0, 0)),
                pl.BlockSpec((1, OW), lambda n: (0, 0)),
            ],
            out_specs=pl.BlockSpec((1, H, OW), lambda n: (n, 0, 0)),
        ),
        compiler_params=pltpu.CompilerParams(
            dimension_semantics=("parallel",),
            vmem_limit_bytes=32 * 1024 * 1024,   # well under v7x's 64 MiB/TC
        ),
    )(xr, w1cat, b1r, w2cat, b2r)

    return out.reshape(N, H, W, Cout)


# ---------------------------------------------------------------------------
# Pure-JAX reference (same semantics as the PyTorch module, bn=False, stride=1)
# ---------------------------------------------------------------------------
def basic_block_reference(x_nhwc, w1, b1, w2, b2, ws):
    dn = ('NHWC', 'HWIO', 'NHWC')
    c1 = lax.conv_general_dilated(x_nhwc, w1, (1, 1), 'SAME', dimension_numbers=dn,
                                  precision=lax.Precision.HIGHEST)
    y1 = jnp.maximum(c1 + b1[None, None, None, :], 0.0)
    c2 = lax.conv_general_dilated(y1, w2, (1, 1), 'SAME', dimension_numbers=dn,
                                  precision=lax.Precision.HIGHEST)
    y2 = c2 + b2[None, None, None, :]
    if ws is None:
        sc = x_nhwc
    else:
        sc = jnp.einsum('nhwc,cd->nhwd', x_nhwc, ws, precision=lax.Precision.HIGHEST)
    return jnp.maximum(y2 + sc, 0.0)


if __name__ == "__main__":
    # Shapes consistent with the module: in_planes=4, planes=8, stride=1
    # -> shortcut is a bias-free 1x1 conv since in_planes != planes.
    N, Cin, Cout, H, W = 2, 4, 8, 16, 16

    key = jax.random.PRNGKey(0)
    k = jax.random.split(key, 6)
    # deterministic synthetic parameters (PyTorch layout (Cout,Cin,kh,kw) -> HWIO)
    w1_t = jax.random.normal(k[0], (Cout, Cin, 3, 3), jnp.float32) * 0.1
    b1 = jax.random.normal(k[1], (Cout,), jnp.float32) * 0.1
    w2_t = jax.random.normal(k[2], (Cout, Cout, 3, 3), jnp.float32) * 0.1
    b2 = jax.random.normal(k[3], (Cout,), jnp.float32) * 0.1
    ws_t = jax.random.normal(k[4], (Cout, Cin, 1, 1), jnp.float32) * 0.1

    w1 = jnp.transpose(w1_t, (2, 3, 1, 0))           # (3,3,Cin,Cout)  HWIO
    w2 = jnp.transpose(w2_t, (2, 3, 1, 0))           # (3,3,Cout,Cout) HWIO
    ws = jnp.transpose(ws_t[:, :, 0, 0], (1, 0))     # (Cin,Cout)

    # input in PyTorch NCHW, converted to NHWC (channels-last) for the kernel
    x_nchw = jax.random.normal(k[5], (N, Cin, H, W), jnp.float32)
    x_nhwc = jnp.transpose(x_nchw, (0, 2, 3, 1))

    ref = basic_block_reference(x_nhwc, w1, b1, w2, b2, ws)

    # --- float32 path (exact check) ---
    params32 = prepare_basic_block_params(w1, b1, w2, b2, ws, W, dtype=jnp.float32)
    out32 = jax.block_until_ready(basic_block_forward(x_nhwc, params32))
    assert out32.shape == (N, H, W, Cout)
    assert jnp.allclose(out32, ref, atol=1e-3, rtol=1e-3), "f32 mismatch vs reference"

    # --- bfloat16 path (default: 2x MXU throughput / half the HBM bytes) ---
    params16 = prepare_basic_block_params(w1, b1, w2, b2, ws, W)   # dtype=bf16 default
    out16 = jax.block_until_ready(basic_block_forward(x_nhwc, params16))
    assert out16.shape == (N, H, W, Cout)
    assert jnp.allclose(out16.astype(jnp.float32), ref, atol=1e-1, rtol=1e-1), \
        "bf16 mismatch vs reference"

    print("KERNEL_OK")
</pallas_src>

<mosaic_0001>
module attributes {stable_mosaic.version = 11 : i64} {
  func.func @kernel(%arg0: i32, %arg1: memref<1x16x64xf32, #tpu.memory_space<vmem>>, %arg2: memref<192x128xf32, #tpu.memory_space<vmem>>, %arg3: memref<1x128xf32, #tpu.memory_space<vmem>>, %arg4: memref<448x128xf32, #tpu.memory_space<vmem>>, %arg5: memref<1x128xf32, #tpu.memory_space<vmem>>, %arg6: memref<1x16x128xf32, #tpu.memory_space<vmem>>) attributes {dimension_semantics = [#tpu.dimension_semantics<parallel>], iteration_bounds = array<i64: 2>, scalar_prefetch = 0 : i64, scratch_operands = 0 : i64, tpu.core_type = #tpu.core_type<tc>, window_params = [{transform_indices = @transform_0, window_bounds = array<i64: 1, 16, 64>}, {pipeline_mode = #tpu.pipeline_mode<synchronous>, transform_indices = @transform_1, window_bounds = array<i64: 192, 128>}, {pipeline_mode = #tpu.pipeline_mode<synchronous>, transform_indices = @transform_2, window_bounds = array<i64: 1, 128>}, {pipeline_mode = #tpu.pipeline_mode<synchronous>, transform_indices = @transform_3, window_bounds = array<i64: 448, 128>}, {pipeline_mode = #tpu.pipeline_mode<synchronous>, transform_indices = @transform_4, window_bounds = array<i64: 1, 128>}, {transform_indices = @transform_5, window_bounds = array<i64: 1, 16, 128>}]} {
    %c0 = arith.constant 0 : index
    %c0_0 = arith.constant 0 : index
    %c0_1 = arith.constant 0 : index
    %0 = vector.load %arg1[%c0, %c0_0, %c0_1] : memref<1x16x64xf32, #tpu.memory_space<vmem>>, vector<1x16x64xf32>
    %1 = vector.shape_cast %0 : vector<1x16x64xf32> to vector<16x64xf32>
    %cst = arith.constant 0.000000e+00 : f32
    %2 = vector.broadcast %cst : f32 to vector<1x64xf32>
    %3 = vector.extract_strided_slice %1 {offsets = [0, 0], sizes = [15, 64], strides = [1, 1]} : vector<16x64xf32> to vector<15x64xf32>
    %4 = tpu.concatenate %2, %3 in 0 : vector<1x64xf32>, vector<15x64xf32> -> vector<16x64xf32>
    %5 = vector.extract_strided_slice %1 {offsets = [1, 0], sizes = [15, 64], strides = [1, 1]} : vector<16x64xf32> to vector<15x64xf32>
    %6 = tpu.concatenate %5, %2 in 0 : vector<15x64xf32>, vector<1x64xf32> -> vector<16x64xf32>
    %7 = tpu.concatenate %4, %1, %6 in 1 : vector<16x64xf32>, vector<16x64xf32>, vector<16x64xf32> -> vector<16x192xf32>
    %c0_2 = arith.constant 0 : index
    %c0_3 = arith.constant 0 : index
    %8 = vector.load %arg2[%c0_2, %c0_3] : memref<192x128xf32, #tpu.memory_space<vmem>>, vector<192x128xf32>
    %cst_4 = arith.constant dense<0.000000e+00> : vector<16x128xf32>
    %9 = tpu.matmul %7, %8, %cst_4 {dimension_numbers = #tpu.dot_dimension_numbers<[1], [0], [0], [1], [0, 0, 1, 1], [], []>} : vector<16x192xf32>, vector<192x128xf32>, vector<16x128xf32> -> vector<16x128xf32>
    %c0_5 = arith.constant 0 : index
    %c0_6 = arith.constant 0 : index
    %10 = vector.load %arg3[%c0_5, %c0_6] : memref<1x128xf32, #tpu.memory_space<vmem>>, vector<1x128xf32>
    %11 = vector.broadcast %10 : vector<1x128xf32> to vector<16x128xf32>
    %12 = arith.addf %9, %11 : vector<16x128xf32>
    %cst_7 = arith.constant 0.000000e+00 : f32
    %13 = vector.broadcast %cst_7 : f32 to vector<16x128xf32>
    %14 = arith.maximumf %12, %13 : vector<16x128xf32>
    %cst_8 = arith.constant 0.000000e+00 : f32
    %15 = vector.broadcast %cst_8 : f32 to vector<1x128xf32>
    %16 = vector.extract_strided_slice %14 {offsets = [0, 0], sizes = [15, 128], strides = [1, 1]} : vector<16x128xf32> to vector<15x128xf32>
    %17 = tpu.concatenate %15, %16 in 0 : vector<1x128xf32>, vector<15x128xf32> -> vector<16x128xf32>
    %18 = vector.extract_strided_slice %14 {offsets = [1, 0], sizes = [15, 128], strides = [1, 1]} : vector<16x128xf32> to vector<15x128xf32>
    %19 = tpu.concatenate %18, %15 in 0 : vector<15x128xf32>, vector<1x128xf32> -> vector<16x128xf32>
    %20 = tpu.concatenate %17, %14, %19, %1 in 1 : vector<16x128xf32>, vector<16x128xf32>, vector<16x128xf32>, vector<16x64xf32> -> vector<16x448xf32>
    %c0_9 = arith.constant 0 : index
    %c0_10 = arith.constant 0 : index
    %21 = vector.load %arg4[%c0_9, %c0_10] : memref<448x128xf32, #tpu.memory_space<vmem>>, vector<448x128xf32>
    %cst_11 = arith.constant dense<0.000000e+00> : vector<16x128xf32>
    %22 = tpu.matmul %20, %21, %cst_11 {dimension_numbers = #tpu.dot_dimension_numbers<[1], [0], [0], [1], [0, 0, 1, 1], [], []>} : vector<16x448xf32>, vector<448x128xf32>, vector<16x128xf32> -> vector<16x128xf32>
    %c0_12 = arith.constant 0 : index
    %c0_13 = arith.constant 0 : index
    %23 = vector.load %arg5[%c0_12, %c0_13] : memref<1x128xf32, #tpu.memory_space<vmem>>, vector<1x128xf32>
    %24 = vector.broadcast %23 : vector<1x128xf32> to vector<16x128xf32>
    %25 = arith.addf %22, %24 : vector<16x128xf32>
    %cst_14 = arith.constant 0.000000e+00 : f32
    %26 = vector.broadcast %cst_14 : f32 to vector<16x128xf32>
    %27 = arith.maximumf %25, %26 : vector<16x128xf32>
    %c0_15 = arith.constant 0 : index
    %c0_16 = arith.constant 0 : index
    %c0_17 = arith.constant 0 : index
    %28 = vector.load %arg6[%c0_15, %c0_16, %c0_17] : memref<1x16x128xf32, #tpu.memory_space<vmem>>, vector<1x16x128xf32>
    %29 = vector.shape_cast %28 : vector<1x16x128xf32> to vector<16x128xf32>
    %30 = vector.shape_cast %27 : vector<16x128xf32> to vector<1x16x128xf32>
    tpu.vector_store %arg6[%c0_15, %c0_16, %c0_17], %30 {strides = array<i32>} : memref<1x16x128xf32, #tpu.memory_space<vmem>>, vector<1x16x128xf32>,
    return
  }
  func.func @transform_0(%arg0: i32) -> (i32, i32, i32) {
    %c0_i32 = arith.constant 0 : i32
    %c0_i32_0 = arith.constant 0 : i32
    %c0_i32_1 = arith.constant 0 : i32
    return %arg0, %c0_i32, %c0_i32_0 : i32, i32, i32
  }
  func.func @transform_1(%arg0: i32) -> (i32, i32) {
    %c0_i32 = arith.constant 0 : i32
    %c0_i32_0 = arith.constant 0 : i32
    %c0_i32_1 = arith.constant 0 : i32
    return %c0_i32, %c0_i32_0 : i32, i32
  }
  func.func @transform_2(%arg0: i32) -> (i32, i32) {
    %c0_i32 = arith.constant 0 : i32
    %c0_i32_0 = arith.constant 0 : i32
    %c0_i32_1 = arith.constant 0 : i32
    return %c0_i32, %c0_i32_0 : i32, i32
  }
  func.func @transform_3(%arg0: i32) -> (i32, i32) {
    %c0_i32 = arith.constant 0 : i32
    %c0_i32_0 = arith.constant 0 : i32
    %c0_i32_1 = arith.constant 0 : i32
    return %c0_i32, %c0_i32_0 : i32, i32
  }
  func.func @transform_4(%arg0: i32) -> (i32, i32) {
    %c0_i32 = arith.constant 0 : i32
    %c0_i32_0 = arith.constant 0 : i32
    %c0_i32_1 = arith.constant 0 : i32
    return %c0_i32, %c0_i32_0 : i32, i32
  }
  func.func @transform_5(%arg0: i32) -> (i32, i32, i32) {
    %c0_i32 = arith.constant 0 : i32
    %c0_i32_0 = arith.constant 0 : i32
    %c0_i32_1 = arith.constant 0 : i32
    return %arg0, %c0_i32, %c0_i32_0 : i32, i32, i32
  }
}

</mosaic_0001>

<bundles_post_ra>
// kernel: basic_block_forward.1
= control target key start
LH: loop header
LB: loop body
LE: loop exit
PB: predicated region body
PF: predicated region fallthrough
CT: control target
= control target key end

     0   :  { %10 = vsyncpa [#allocation3], 0  ;;  %s720_s18 = smov 0   ;;  %s851_s0 = inlined_call_operand.vmem [shape: f32[2,16,64], index: 0, kind: input, shape index: {}]   ;;  %s852_s1 = inlined_call_operand.vmem [shape: f32[192,128], index: 1, kind: input, shape index: {}]   ;;  %s853_s2 = inlined_call_operand.vmem [shape: f32[1,128], index: 2, kind: input, shape index: {}]   ;;  %s854_s3 = inlined_call_operand.hbm [shape: f32[448,128], index: 3, kind: input, shape index: {}]   ;;  %s855_s4 = inlined_call_operand.vmem [shape: f32[1,128], index: 4, kind: input, shape index: {}]   ;;  %s856_s5 = inlined_call_operand.vmem [shape: f32[2,16,128], index: 5, kind: output, shape index: {}]  }
   0x1 LB: > { %s174_s21 = sshll.u32 %s854_s3, 4  ;;  %s590_s22 = sadd.s32 4294967295, %s684_s18   ;;  %s684_s18 = sphi %s720_s18, %s16_s18   ;;  %s175_s21 = int_to_ptr.hbm [resolvable:$true] %s174_s21 }
   0x2   : > { %p592_p0 = scmp.ge.s32.totalorder %s684_s18, 1  ;;  %p157_p1 = scmp.lt.s32.totalorder %s684_s18, 3 }
   0x3   : > { %p628_p2 = scmp.eq.s32.totalorder %s590_s22, 0  ;;  %s686_s23 = smov [#allocation2]  }
   0x4   : > { %p158_p3 = pnand %p592_p0, %p157_p1  ;;  %s176_s24 = sshll.u32 %s686_s23, 4  ;;  %s177_s24 = int_to_ptr.vmem [resolvable:$true] %s176_s24 }
   0x5   : > { %s687_s25 = smov 128   ;;  %s688_s26 = smov 8  }
   0x6   : > { %p624_p4 = pneg %p158_p3  ;;  %203 = sbr.rel (%p158_p3) target bundleno = 422 (0x1a6), region = 40 }
   0x8   : > { %p625_p5 = pnand %p628_p2, %p624_p4 }
   0xa   : > { %627 = dma.hbm_to_vmem [thread:$0]  (!%p625_p5), %s175_s21, 7168, %s177_s24, [#allocation3], %s687_s25, %s687_s25, %s688_s26  }
   0xb   : > { %679 = dma.done.wait (%p628_p2), [#allocation3], 7168  }
   0xc   : > { %681 = vsyncadd (%p628_p2), [#allocation3], 4294960128  ;;  %p232_p6 = scmp.lt.s32.totalorder %s590_s22, 1  ;;  %v283_v1 = vld [vmem:[%s852_s1 + $0x78] sm:$0xff]  ;;  %s689_s8 = smov 64   ;;  %v282_v2 = vld [vmem:[%s852_s1 + $0x70] sm:$0xff] }
   0xd   : > { %301 = vmatpush.msra.mxu0 %v283_v1  ;;  %v281_v3 = vld [vmem:[%s852_s1 + $0x68] sm:$0xff]  ;;  %v280_v4 = vld [vmem:[%s852_s1 + $0x60] sm:$0xff]  ;;  %v291_v5 = vld [vmem:[%s852_s1 + $0xb8] sm:$0xff]  ;;  %vm253_vm0 = vcmask 1046528   ;;  %vm265_vm1 = vcmask 523264   ;;  %vm246_vm2 = vcmask 1040384  }
   0xe   : > { %s858_s22 = smov (!%p232_p6, %s590_s22), 1  ;;  %v290_v6 = vld [vmem:[%s852_s1 + $0xb0] sm:$0xff]  ;;  %332 = vmatpush.msra.mxu1 %v291_v5  ;;  %v279_v8 = vld [vmem:[%s852_s1 + $0x58] sm:$0xff]  ;;  %v289_v9 = vld [vmem:[%s852_s1 + $0xa8] sm:$0xff] }
   0xf   : > { %s610_s27 = sshll.u32 %s858_s22, 4  ;;  %302 = vmatpush.msra.mxu0 %v282_v2  ;;  %v278_v10 = vld [vmem:[%s852_s1 + $0x50] sm:$0xff]  ;;  %v288_v11 = vld [vmem:[%s852_s1 + $0xa0] sm:$0xff]  ;;  %v277_v12 = vld [vmem:[%s852_s1 + $0x48] sm:$0xff] }
  0x10   : > { %s236_s30 = scalar_lea.vmem %s851_s0, %s610_s27  ;;  %333 = vmatpush.msra.mxu1 %v290_v6  ;;  %v287_v13 = vld [vmem:[%s852_s1 + $0x98] sm:$0xff]  ;;  %v276_v14 = vld [vmem:[%s852_s1 + $0x40] sm:$0xff]  ;;  %v286_v15 = vld [vmem:[%s852_s1 + $0x90] sm:$0xff]  ;;  %s241_s17 = scalar_lea.vmem %s856_s5, %s610_s27 }
  0x11   : > { %v739_v0 = vld [vmem:[%s236_s30] sm:$0xff]  ;;  %303 = vmatpush.msra.mxu0 %v281_v3  ;;  %v760_v7 = vld [vmem:[%s236_s30 + $0x8] sm:$0xff]  ;;  %v275_v16 = vld [vmem:[%s852_s1 + $0x38] sm:$0xff] }
  0x12   : > { %259 = vrot.lane.b32.xlu0 %v739_v0, %s689_s8  ;;  %334 = vmatpush.msra.mxu1 %v289_v9  ;;  %v274_v17 = vld [vmem:[%s852_s1 + $0x30] sm:$0xff]  ;;  %v273_v18 = vld [vmem:[%s852_s1 + $0x28] sm:$0xff]  ;;  %v272_v19 = vld [vmem:[%s852_s1 + $0x20] sm:$0xff]  ;;  %v254_v25 = vrot.slane %v739_v0, 1  ;;  %v255_v26 = vrot.slane %v760_v7, 1  ;;  %v247_v55 = vrot.slane %v739_v0, 7 }
  0x13   : > { %304 = vmatpush.msra.mxu0 %v280_v4  ;;  %v271_v20 = vld [vmem:[%s852_s1 + $0x18] sm:$0xff]  ;;  %v270_v21 = vld [vmem:[%s852_s1 + $0x10] sm:$0xff]  ;;  %v269_v22 = vld [vmem:[%s852_s1 + $0x8] sm:$0xff]  ;;  %v248_v1 = vrot.slane %v760_v7, 7 }
  0x14   : > { %335 = vmatpush.msra.mxu1 %v288_v11  ;;  %v268_v23 = vld [vmem:[%s852_s1] sm:$0xff]  ;;  %v285_v24 = vld [vmem:[%s852_s1 + $0x88] sm:$0xff]  ;;  %v256_v28 = vsel %vm253_vm0, %v254_v25, %v255_v26  ;;  %v258_v29 = vsel %vm253_vm0, %v255_v26, 0.0  ;;  %v394_v30 = vld [vmem:[#allocation2 + $0xf8] sm:$0xff]  ;;  %v252_v60 = vsel %vm246_vm2, 0.0, %v247_v55 }
  0x15   : > { %305 = vmatpush.msra.mxu0 %v279_v8  ;;  %v284_v27 = vld [vmem:[%s852_s1 + $0x80] sm:$0xff]  ;;  %v378_v31 = vld [vmem:[#allocation2 + $0x78] sm:$0xff]  ;;  %v393_v32 = vld [vmem:[#allocation2 + $0xf0] sm:$0xff]  ;;  %450 = vmatpush.msra.mxu3 %v394_v30  ;;  %v249_v2 = vsel %vm246_vm2, %v247_v55, %v248_v1 }
  0x16   : > { %336 = vmatpush.msra.mxu1 %v287_v13  ;;  %427 = vmatpush.msra.mxu2 %v378_v31  ;;  %v377_v33 = vld [vmem:[#allocation2 + $0x70] sm:$0xff]  ;;  %v392_v34 = vld [vmem:[#allocation2 + $0xe8] sm:$0xff]  ;;  %v410_v36 = vld [vmem:[#allocation2 + $0x178] sm:$0xff] }
  0x17   : > { %306 = vmatpush.msra.mxu0 %v278_v10  ;;  %v376_v35 = vld [vmem:[#allocation2 + $0x68] sm:$0xff]  ;;  %451 = vmatpush.msra.mxu3 %v393_v32  ;;  %v391_v37 = vld [vmem:[#allocation2 + $0xe0] sm:$0xff]  ;;  %v409_v39 = vld [vmem:[#allocation2 + $0x170] sm:$0xff] }
  0x18   : > { %337 = vmatpush.msra.mxu1 %v286_v15  ;;  %428 = vmatpush.msra.mxu2 %v377_v33  ;;  %v375_v38 = vld [vmem:[#allocation2 + $0x60] sm:$0xff]  ;;  %v408_v40 = vld [vmem:[#allocation2 + $0x168] sm:$0xff]  ;;  %v390_v41 = vld [vmem:[#allocation2 + $0xd8] sm:$0xff] }
  0x19   : > { %307 = vmatpush.msra.mxu0 %v277_v12  ;;  %452 = vmatpush.msra.mxu3 %v392_v34  ;;  %v374_v42 = vld [vmem:[#allocation2 + $0x58] sm:$0xff]  ;;  %v407_v43 = vld [vmem:[#allocation2 + $0x160] sm:$0xff]  ;;  %v389_v44 = vld [vmem:[#allocation2 + $0xd0] sm:$0xff] }
  0x1a   : > { %261 = vrot.lane.b32.xlu0 %v760_v7, %s689_s8  ;;  %338 = vmatpush.msra.mxu1 %v285_v24  ;;  %v373_v45 = vld [vmem:[#allocation2 + $0x50] sm:$0xff]  ;;  %v406_v46 = vld [vmem:[#allocation2 + $0x158] sm:$0xff]  ;;  %v388_v47 = vld [vmem:[#allocation2 + $0xc8] sm:$0xff] }
  0x1b   : > { %308 = vmatpush.msra.mxu0 %v276_v14  ;;  %429 = vmatpush.msra.mxu2 %v376_v35  ;;  %v372_v48 = vld [vmem:[#allocation2 + $0x48] sm:$0xff]  ;;  %v405_v49 = vld [vmem:[#allocation2 + $0x150] sm:$0xff]  ;;  %v387_v50 = vld [vmem:[#allocation2 + $0xc0] sm:$0xff] }
  0x1c   : > { %339 = vmatpush.msra.mxu1 %v284_v27  ;;  %453 = vmatpush.msra.mxu3 %v391_v37  ;;  %v371_v51 = vld [vmem:[#allocation2 + $0x40] sm:$0xff]  ;;  %v404_v52 = vld [vmem:[#allocation2 + $0x148] sm:$0xff]  ;;  %v386_v53 = vld [vmem:[#allocation2 + $0xb8] sm:$0xff] }
  0x1d   : > { %309 = vmatpush.msra.mxu0 %v275_v16  ;;  %601 = vmatmul.msk.f32.vlgmr.msra.gmra.mxu1 %vm265_vm1, %v256_v28  ;;  %v370_v54 = vld [vmem:[#allocation2 + $0x38] sm:$0xff]  ;;  %v385_v56 = vld [vmem:[#allocation2 + $0xb0] sm:$0xff]  ;;  %v384_v58 = vld [vmem:[#allocation2 + $0xa8] sm:$0xff] }
  0x1e   : > { %473 = vmatpush.msrb.mxu1 %v410_v36  ;;  %430 = vmatpush.msra.mxu2 %v375_v38  ;;  %v369_v57 = vld [vmem:[#allocation2 + $0x30] sm:$0xff]  ;;  %v368_v59 = vld [vmem:[#allocation2 + $0x28] sm:$0xff]  ;;  %v383_v61 = vld [vmem:[#allocation2 + $0xa0] sm:$0xff] }
  0x1f   : > { %310 = vmatpush.msra.mxu0 %v274_v17  ;;  %454 = vmatpush.msra.mxu3 %v390_v41  ;;  %v367_v5 = vld [vmem:[#allocation2 + $0x20] sm:$0xff]  ;;  %v382_v6 = vld [vmem:[#allocation2 + $0x98] sm:$0xff]  ;;  %v381_v10 = vld [vmem:[#allocation2 + $0x90] sm:$0xff] }
  0x20   : > { %474 = vmatpush.msrb.mxu1 %v409_v39  ;;  %431 = vmatpush.msra.mxu2 %v374_v42  ;;  %v403_v8 = vld [vmem:[#allocation2 + $0x140] sm:$0xff]  ;;  %v366_v9 = vld [vmem:[#allocation2 + $0x18] sm:$0xff]  ;;  %v365_v12 = vld [vmem:[#allocation2 + $0x10] sm:$0xff] }
  0x21   : > { %311 = vmatpush.msra.mxu0 %v273_v18  ;;  %455 = vmatpush.msra.mxu3 %v389_v44  ;;  %v402_v11 = vld [vmem:[#allocation2 + $0x138] sm:$0xff]  ;;  %v380_v13 = vld [vmem:[#allocation2 + $0x88] sm:$0xff]  ;;  %v401_v14 = vld [vmem:[#allocation2 + $0x130] sm:$0xff] }
  0x22   : > { %475 = vmatpush.msrb.mxu1 %v408_v40  ;;  %432 = vmatpush.msra.mxu2 %v373_v45  ;;  %v364_v15 = vld [vmem:[#allocation2 + $0x8] sm:$0xff]  ;;  %v379_v16 = vld [vmem:[#allocation2 + $0x80] sm:$0xff]  ;;  %v418_v17 = vld [vmem:[#allocation2 + $0x1b8] sm:$0xff] }
  0x23   : > { %312 = vmatpush.msra.mxu0 %v272_v19  ;;  %456 = vmatpush.msra.mxu3 %v388_v47  ;;  %v400_v18 = vld [vmem:[#allocation2 + $0x128] sm:$0xff]  ;;  %v363_v19 = vld [vmem:[#allocation2] sm:$0xff]  ;;  %v397_v25 = vld [vmem:[#allocation2 + $0x110] sm:$0xff] }
  0x24   : > { %476 = vmatpush.msrb.mxu1 %v407_v43  ;;  %433 = vmatpush.msra.mxu2 %v372_v48  ;;  %v415_v24 = vld [vmem:[#allocation2 + $0x1a0] sm:$0xff]  ;;  %v414_v26 = vld [vmem:[#allocation2 + $0x198] sm:$0xff]  ;;  %v396_v27 = vld [vmem:[#allocation2 + $0x108] sm:$0xff] }
  0x25   : > { %313 = vmatpush.msra.mxu0 %v271_v20  ;;  %602 = vmatmul.msk.f32.gmra.mxu1 %vm265_vm1, %v258_v29  ;;  %v417_v20 = vld [vmem:[#allocation2 + $0x1b0] sm:$0xff]  ;;  %v395_v29 = vld [vmem:[#allocation2 + $0x100] sm:$0xff]  ;;  %v412_v30 = vld [vmem:[#allocation2 + $0x188] sm:$0xff] }
  0x26   : > { %477 = vmatpush.msrb.mxu1 %v406_v46  ;;  %457 = vmatpush.msra.mxu3 %v387_v50  ;;  %v413_v28 = vld [vmem:[#allocation2 + $0x190] sm:$0xff]  ;;  %v411_v31 = vld [vmem:[#allocation2 + $0x180] sm:$0xff]  ;;  %vm603_vm3 = vmneg %vm246_vm2 }
  0x27   : > { %314 = vmatpush.msra.mxu0 %v270_v21  ;;  %434 = vmatpush.msra.mxu2 %v371_v51  ;;  %v399_v21 = vld [vmem:[#allocation2 + $0x120] sm:$0xff] }
  0x28   : > { %478 = vmatpush.msrb.mxu1 %v405_v49  ;;  %458 = vmatpush.msra.mxu3 %v386_v53  ;;  %v642_v32 = vld [vmem:[%s853_s2] ss:$0 sm:$0xff] }
  0x29   : > { %315 = vmatpush.msra.mxu0 %v269_v22  ;;  %435 = vmatpush.msra.mxu2 %v370_v54  ;;  %v416_v22 = vld [vmem:[#allocation2 + $0x1a8] sm:$0xff]  ;;  %v643_v48 = vld [vmem:[%s855_s4] ss:$0 sm:$0xff] }
  0x2a   : > { %479 = vmatpush.msrb.mxu1 %v404_v52  ;;  %459 = vmatpush.msra.mxu3 %v385_v56 }
  0x2b   : > { %316 = vmatpush.msra.mxu0 %v268_v23  ;;  %436 = vmatpush.msra.mxu2 %v369_v57  ;;  %v398_v23 = vld [vmem:[#allocation2 + $0x118] sm:$0xff] }
  0x2c   : > { %460 = vmatpush.msra.mxu3 %v384_v58  ;;  %480 = vmatpush.msrb.mxu1 %v403_v8 }
  0x2d   : > { %437 = vmatpush.msra.mxu2 %v368_v59  ;;  %504 = vmatpush.msrb.mxu0 %v418_v17 }
  0x2e   : > { %461 = vmatpush.msra.mxu3 %v383_v61  ;;  %481 = vmatpush.msrb.mxu1 %v402_v11 }
  0x2f   : > { %438 = vmatpush.msra.mxu2 %v367_v5  ;;  %505 = vmatpush.msrb.mxu0 %v417_v20 }
  0x30   : > { %462 = vmatpush.msra.mxu3 %v382_v6  ;;  %482 = vmatpush.msrb.mxu1 %v401_v14 }
  0x31   : > { %439 = vmatpush.msra.mxu2 %v366_v9  ;;  %506 = vmatpush.msrb.mxu0 %v416_v22 }
  0x32   : > { %463 = vmatpush.msra.mxu3 %v381_v10  ;;  %483 = vmatpush.msrb.mxu1 %v400_v18 }
  0x33   : > { %440 = vmatpush.msra.mxu2 %v365_v12  ;;  %507 = vmatpush.msrb.mxu0 %v415_v24 }
  0x34   : > { %464 = vmatpush.msra.mxu3 %v380_v13  ;;  %484 = vmatpush.msrb.mxu1 %v399_v21 }
  0x35   : > { %441 = vmatpush.msra.mxu2 %v364_v15  ;;  %508 = vmatpush.msrb.mxu0 %v414_v26 }
  0x36   : > { %465 = vmatpush.msra.mxu3 %v379_v16  ;;  %485 = vmatpush.msrb.mxu1 %v398_v23 }
  0x37   : > { %442 = vmatpush.msra.mxu2 %v363_v19  ;;  %509 = vmatpush.msrb.mxu0 %v413_v28 }
  0x38   : > { %486 = vmatpush.msrb.mxu1 %v397_v25 }
  0x39   : > { %612 = vmatpush.msrb.mxu2 %v418_v17  ;;  %510 = vmatpush.msrb.mxu0 %v412_v30 }
  0x3a   : > { %487 = vmatpush.msrb.mxu1 %v396_v27 }
  0x3b   : > { %613 = vmatpush.msrb.mxu2 %v417_v20  ;;  %511 = vmatpush.msrb.mxu0 %v411_v31 }
  0x3c   : > { %488 = vmatpush.msrb.mxu1 %v395_v29 }
  0x3d   : > { %614 = vmatpush.msrb.mxu2 %v416_v22 }
  0x3f   : > { %615 = vmatpush.msrb.mxu2 %v415_v24 }
  0x41   : > { %616 = vmatpush.msrb.mxu2 %v414_v26 }
  0x43   : > { %617 = vmatpush.msrb.mxu2 %v413_v28 }
  0x45   : > { %618 = vmatpush.msrb.mxu2 %v412_v30 }
  0x47   : > { %619 = vmatpush.msrb.mxu2 %v411_v31 }
  0x84   : > { %v260_v62 = vpop.permute.xlu0 %259 }
  0x85   : > { %v266_v63 = vsel %vm265_vm1, %v252_v60, %v260_v62 }
  0x86   : > { %317 = vmatmul.f32.vlgmr.msra.gmra.mxu0 %v266_v63 }
  0x8c   : > { %v262_v3 = vpop.permute.xlu0 %261 }
  0x8d   : > { %v267_v4 = vsel %vm265_vm1, %v249_v2, %v262_v3 }
  0x8e   : > { %320 = vmatmul.f32.gmra.mxu0 %v267_v4 }
  0x96   : > { %606 = vmatmul.msk.f32.vlgmr.msrb.gmra.mxu0 %vm265_vm1, %v739_v0 }
  0x9a   : > { %v341_v33 = vpop.f32.mrf.mxu1 }
  0xa2   : > { %v344_v40 = vpop.f32.mrf.mxu1 }
 0x103   : > { %v318_v34 = vpop.f32.mrf.mxu0 }
 0x104   : > { %v319_v35 = vadd.f32 %v642_v32, %v318_v34 }
 0x106   : > { %v342_v36 = vadd.f32 %v341_v33, %v319_v35 }
 0x108   : > { %v347_v37 = vmax.f32 %v342_v36, 0.0 }
 0x10a   : > { %466 = vmatmul.f32.vlgmr.msra.gmra.mxu3 %v347_v37  ;;  %v351_v38 = vrot.slane %v347_v37, 7  ;;  %v357_v43 = vrot.slane %v347_v37, 1 }
 0x10b   : > { %v321_v39 = vpop.f32.mrf.mxu0 }
 0x10c   : > { %v322_v41 = vadd.f32 %v642_v32, %v321_v39  ;;  %604 = vmatmul.msk.f32.vlgmr.msra.gmra.mxu2 %vm603_vm3, %v351_v38 }
 0x10e   : > { %v345_v0 = vadd.f32 %v344_v40, %v322_v41 }
 0x110   : > { %v348_v42 = vmax.f32 %v345_v0, 0.0 }
 0x112   : > { %v358_v44 = vrot.slane %v348_v42, 1  ;;  %469 = vmatmul.f32.gmra.mxu3 %v348_v42  ;;  %v352_v45 = vrot.slane %v348_v42, 7 }
 0x113   : > { %v513_v54 = vpop.f32.mrf.mxu0 }
 0x114   : > { %v353_v46 = vsel %vm246_vm2, %v351_v38, %v352_v45  ;;  %v359_v47 = vsel %vm253_vm0, %v357_v43, %v358_v44 }
 0x115   : > { %446 = vmatmul.f32.gmra.mxu2 %v353_v46  ;;  %489 = vmatmul.f32.vlgmr.msrb.gmra.mxu1 %v359_v47 }
 0x11d   : > { %605 = vmatmul.msk.f32.gmra.mxu1 %vm253_vm0, %v358_v44  ;;  %607 = vmatmul.msk.f32.vlgmr.msrb.gmra.mxu2 %vm265_vm1, %v760_v7 }
 0x18d   : > { %v467_v50 = vpop.f32.mrf.mxu3 }
 0x18f   : > { %v444_v49 = vpop.f32.mrf.mxu2 }
 0x190   : > { %v445_v51 = vadd.f32 %v643_v48, %v444_v49 }
 0x192   : > { %v468_v52 = vadd.f32 %v467_v50, %v445_v51  ;;  %v490_v53 = vpop.f32.mrf.mxu1 }
 0x194   : > { %v491_v55 = vadd.f32 %v490_v53, %v468_v52 }
 0x195   : > { %v470_v59 = vpop.f32.mrf.mxu3 }
 0x196   : > { %v514_v56 = vadd.f32 %v513_v54, %v491_v55 }
 0x198   : > { %v519_v57 = vmax.f32 %v514_v56, 0.0  ;;  %v447_v58 = vpop.f32.mrf.mxu2 }
 0x199   : > { %v448_v7 = vadd.f32 %v643_v48, %v447_v58 }
 0x19a   : > { %521 = vst [vmem:[%s241_s17] sm:$0xff] %v519_v57  ;;  %v493_v61 = vpop.f32.mrf.mxu1 }
 0x19b   : > { %v471_v60 = vadd.f32 %v470_v59, %v448_v7 }
 0x19d   : > { %v494_v62 = vadd.f32 %v493_v61, %v471_v60 }
 0x1a0   : > { %v516_v63 = vpop.f32.mrf.mxu2 }
 0x1a1   : > { %v517_v1 = vadd.f32 %v516_v63, %v494_v62 }
 0x1a3   : > { %v520_v2 = vmax.f32 %v517_v1, 0.0 }
 0x1a5   : > { %522 = vst [vmem:[%s241_s17 + $0x8] sm:$0xff] %v520_v2 }
 0x1a6 PF: > { %s16_s18 = sadd.s32 1, %s684_s18  }
 0x1a7   : > { %p13_p7 = scmp.ge.s32.totalorder %s16_s18, 4  }
 0x1a9   :  { %15 = sbr.rel (!%p13_p7) target bundleno = 1 (0x1), region = 75 }
 0x1ae   :  { %544 = vsyncpa [#allocation3], 1 }
 0x1af   :  { %546 = vsyncpa [#allocation3 + $0x1], 1 }

</bundles_post_ra>
